<compile_context>
chip_gen: v6e
topology: v6e:2x2x1
jax: 0.10.0
libtpu: 0.0.40
codegen_flags: <defaults>
</compile_context>

<pallas_src>
import jax
import jax.numpy as jnp
from jax.experimental import pallas as pl
from jax.experimental.pallas import tpu as pltpu

_LANE = 128                    # TPU lane width (last dim multiple)
_MAX_COLS = 1024               # lane-dense slab width cap (multiple of 128)
_PER_BUF_BUDGET = 2 * 1024 * 1024   # bytes per VMEM buffer; x4 buffers <= 8 MiB


def _identity_kernel(x_ref, o_ref):
    # Whole-tile load / store (identity).
    o_ref[...] = x_ref[...]


def _run_identity_2d(x2d, block_rows):
    rows, cols = x2d.shape
    nbytes = x2d.size * x2d.dtype.itemsize
    grid = (pl.cdiv(rows, block_rows),)
    return pl.pallas_call(
        _identity_kernel,
        out_shape=jax.ShapeDtypeStruct((rows, cols), x2d.dtype),
        grid=grid,
        in_specs=[pl.BlockSpec((block_rows, cols), lambda i: (i, 0))],
        out_specs=pl.BlockSpec((block_rows, cols), lambda i: (i, 0)),
        input_output_aliases={0: 0},
        cost_estimate=pl.CostEstimate(
            flops=0, transcendentals=0, bytes_accessed=2 * nbytes),
        compiler_params=pltpu.CompilerParams(
            dimension_semantics=("parallel",)),
    )(x2d)


def scn_forward(x):
    """Forward pass of SemanticCompositionNetworkModel as a Pallas kernel.

    Args:
      x: jnp.ndarray (any shape; NCHW expected from the PyTorch side).
    Returns:
      jnp.ndarray of the same shape/dtype (identity; see TODO above).
    """
    orig_shape = x.shape
    n = x.size
    itemsize = jnp.dtype(x.dtype).itemsize

    if n % _LANE == 0:
        # Lane-dense layout: grow cols in powers of two up to 1024.
        cols = _LANE
        while cols < _MAX_COLS and n % (cols * 2) == 0:
            cols *= 2
        rows = n // cols
        x2d = x.reshape(rows, cols)

        # Tile rows within the VMEM budget; keep TM a multiple of 8 unless the
        # block covers the full row extent (then the (8,128) rule is waived).
        tm_budget = (_PER_BUF_BUDGET // (cols * itemsize)) // 8 * 8
        tm = min(rows, max(8, tm_budget))
        out2d = _run_identity_2d(x2d, tm)
    else:
        # Fallback: element count not a multiple of 128 -> single full-extent
        # block (full-extent blocks are exempt from the (8,128) constraint).
        x2d = x.reshape(1, n)
        out2d = _run_identity_2d(x2d, 1)

    return out2d.reshape(orig_shape)


# Jit the wrapper so the reshape -> pallas_call -> reshape chain is one XLA
# computation and input_output_aliases can alias an internal buffer (the
# caller's `x` is never donated / invalidated).
scn_forward_jit = jax.jit(scn_forward)


if __name__ == "__main__":
    k0, k1, k2 = jax.random.split(jax.random.PRNGKey(0), 3)

    # Primary small NCHW input consistent with a conv-style module.
    x = jax.random.normal(k0, (2, 4, 16, 16), dtype=jnp.float32)
    y = scn_forward_jit(x)
    jax.block_until_ready(y)
    assert y.shape == x.shape and y.dtype == x.dtype
    assert bool(jnp.all(y == x))

    # Exercise the multi-step tiled ("parallel") path: 1M f32 elements
    # -> (1024, 1024) slab, TM=512, grid=(2,).
    x_big = jax.random.normal(k1, (4, 16, 128, 128), dtype=jnp.float32)
    y_big = scn_forward_jit(x_big)
    jax.block_until_ready(y_big)
    assert bool(jnp.all(y_big == x_big))

    # Exercise the non-multiple-of-128 fallback path (7x7 spatial).
    x_odd = jax.random.normal(k2, (2, 3, 7, 7), dtype=jnp.float32)
    y_odd = scn_forward_jit(x_odd)
    jax.block_until_ready(y_odd)
    assert bool(jnp.all(y_odd == x_odd))

    print("KERNEL_OK")
</pallas_src>

<mosaic_0001>
module attributes {stable_mosaic.version = 11 : i64} {
  func.func @_identity_kernel(%arg0: i32, %arg1: memref<2x1024xf32, #tpu.memory_space<vmem>>, %arg2: memref<2x1024xf32, #tpu.memory_space<vmem>>) attributes {dimension_semantics = [#tpu.dimension_semantics<parallel>], iteration_bounds = array<i64: 1>, scalar_prefetch = 0 : i64, scratch_operands = 0 : i64, tpu.core_type = #tpu.core_type<tc>, window_params = [{transform_indices = @transform_0, window_bounds = array<i64: 2, 1024>}, {transform_indices = @transform_1, window_bounds = array<i64: 2, 1024>}]} {
    %c0 = arith.constant 0 : index
    %c0_0 = arith.constant 0 : index
    %0 = vector.load %arg1[%c0, %c0_0] : memref<2x1024xf32, #tpu.memory_space<vmem>>, vector<2x1024xf32>
    %c0_1 = arith.constant 0 : index
    %c0_2 = arith.constant 0 : index
    %1 = vector.load %arg2[%c0_1, %c0_2] : memref<2x1024xf32, #tpu.memory_space<vmem>>, vector<2x1024xf32>
    tpu.vector_store %arg2[%c0_1, %c0_2], %0 {strides = array<i32>} : memref<2x1024xf32, #tpu.memory_space<vmem>>, vector<2x1024xf32>,
    return
  }
  func.func @transform_0(%arg0: i32) -> (i32, i32) {
    %c0_i32 = arith.constant 0 : i32
    %c0_i32_0 = arith.constant 0 : i32
    return %arg0, %c0_i32 : i32, i32
  }
  func.func @transform_1(%arg0: i32) -> (i32, i32) {
    %c0_i32 = arith.constant 0 : i32
    %c0_i32_0 = arith.constant 0 : i32
    return %arg0, %c0_i32 : i32, i32
  }
}

</mosaic_0001>

<bundles_post_ra>
// kernel: scn_forward.1
= control target key start
LH: loop header
LB: loop body
LE: loop exit
PB: predicated region body
PF: predicated region fallthrough
CT: control target
= control target key end

     0   :  { %s38_s0 = inlined_call_operand.vmem [shape: f32[2,1024], index: 0, kind: input, shape index: {}, may-alias: {0,1}]   ;;  %s39_s1 = inlined_call_operand.vmem [shape: f32[2,1024], index: 1, kind: output, shape index: {}, may-alias: {0,1}]  }
   0x1   :  { %v8_v0 = vld [vmem:[%s38_s0] sm:$0xff]  ;;  %v9_v1 = vld [vmem:[%s38_s0 + $0x8] sm:$0xff] }
   0x2   :  { %10 = vst [vmem:[%s39_s1] sm:$0xff] %v8_v0  ;;  %11 = vst [vmem:[%s39_s1 + $0x8] sm:$0xff] %v9_v1 }

</bundles_post_ra>
